<compile_context>
chip_gen: v5e
topology: v5e:2x2
jax: 0.10.0
libtpu: 0.0.40
codegen_flags: <defaults>
</compile_context>

<pallas_src>
import functools

import jax
import jax.numpy as jnp
from jax.experimental import pallas as pl
from jax.experimental.pallas import tpu as pltpu


# ----------------------------- shared LSTM cell math ---------------------------------

def _lstm_cell(gates, c, H):
    """Gate column order is (i, f, o, g): one sigmoid over a contiguous (., 3H) slab
    plus one tanh -> fewer EUP pushes than PyTorch's (i, f, g, o) layout."""
    sig = jax.nn.sigmoid(gates[:, 0:3 * H])
    i_g = sig[:, 0:H]
    f_g = sig[:, H:2 * H]
    o_g = sig[:, 2 * H:3 * H]
    g_g = jnp.tanh(gates[:, 3 * H:4 * H])
    c_new = f_g * c + i_g * g_g
    h_new = o_g * jnp.tanh(c_new)
    return h_new, c_new


# ------------------------- input projection (hoisted matmul) -------------------------

def _proj1_kernel(x_ref, w_ref, b_ref, o_ref):
    acc = jnp.dot(x_ref[...], w_ref[...], preferred_element_type=jnp.float32)
    o_ref[...] = (acc + b_ref[...]).astype(o_ref.dtype)


def _proj2_kernel(xf_ref, xb_ref, wt_ref, wb_ref, b_ref, o_ref):
    # consumes the previous layer's (fwd, bwd) sequence halves directly (no concat)
    acc = jnp.dot(xf_ref[...], wt_ref[...], preferred_element_type=jnp.float32)
    acc = acc + jnp.dot(xb_ref[...], wb_ref[...], preferred_element_type=jnp.float32)
    o_ref[...] = (acc + b_ref[...]).astype(o_ref.dtype)


def _input_proj(kernel, xs, ws, b, *, tm=512):
    """sum_k xs[k] @ ws[k] + b -> bf16 [M, N]; rows tiled with a cdiv grid."""
    M = xs[0].shape[0]
    N = ws[0].shape[1]
    if M <= tm:
        TM, Mp = M, M                              # single full block (== full dims)
    else:
        TM = tm
        Mp = ((M + TM - 1) // TM) * TM             # pad ragged M with zero rows
    xs_p = [jnp.pad(x, ((0, Mp - M), (0, 0))) if Mp != M else x for x in xs]
    in_specs = ([pl.BlockSpec((TM, x.shape[1]), lambda i: (i, 0)) for x in xs_p]
                + [pl.BlockSpec((w.shape[0], N), lambda i: (0, 0)) for w in ws]
                + [pl.BlockSpec((1, N), lambda i: (0, 0))])
    # TODO(synk): tile N (= 8H) as well for large hidden sizes.
    out = pl.pallas_call(
        kernel,
        out_shape=jax.ShapeDtypeStruct((Mp, N), jnp.bfloat16),
        grid_spec=pltpu.PrefetchScalarGridSpec(
            num_scalar_prefetch=0,
            grid=(Mp // TM,),
            in_specs=in_specs,
            out_specs=pl.BlockSpec((TM, N), lambda i: (i, 0))),
        compiler_params=pltpu.CompilerParams(
            dimension_semantics=("parallel",),
            vmem_limit_bytes=32 * 1024 * 1024),
    )(*xs_p, *ws, b)
    return out if Mp == M else out[:M]


# --------------------- fused bidirectional LSTM recurrence kernel --------------------

def _bilstm_chunk_kernel(pre_f_ref, pre_b_ref, whhf_ref, whhb_ref, len_ref, *rest,
                         emit_seq, chunk, hidden_dim):
    H = hidden_dim
    if emit_seq:
        out_f_ref, out_b_ref, hfin_ref, hf_scr, cf_scr, hb_scr, cb_scr = rest
    else:                                           # last layer: no dead seq writeback
        hfin_ref, hf_scr, cf_scr, hb_scr, cb_scr = rest
        out_f_ref = out_b_ref = None

    ci = pl.program_id(0)
    nT = pl.num_programs(0)

    @pl.when(ci == 0)
    def _():
        hf_scr[...] = jnp.zeros_like(hf_scr)
        cf_scr[...] = jnp.zeros_like(cf_scr)
        hb_scr[...] = jnp.zeros_like(hb_scr)
        cb_scr[...] = jnp.zeros_like(cb_scr)

    lens = len_ref[...]                             # (B, 1) int32
    whh_f = whhf_ref[...]                           # hoisted out of the per-step loop
    whh_b = whhb_ref[...]

    t0_f = ci * chunk                               # global start time, fwd chunk
    t0_b = (nT - 1 - ci) * chunk                    # global start time, bwd chunk

    def step(j, carry):
        h_f, c_f, h_b, c_b = carry                  # f32 (elementwise stays f32: v5e)
        jr = chunk - 1 - j
        t = t0_f + j                                # fwd global timestep
        rt = t0_b + jr                              # bwd global timestep (= T-1-t)

        p_f = pre_f_ref[pl.ds(j, 1), :, :][0]       # (B, 4H) bf16 preactivation
        p_b = pre_b_ref[pl.ds(jr, 1), :, :][0]

        g_f = p_f.astype(jnp.float32) + jnp.dot(h_f.astype(jnp.bfloat16), whh_f,
                                                preferred_element_type=jnp.float32)
        g_b = p_b.astype(jnp.float32) + jnp.dot(h_b.astype(jnp.bfloat16), whh_b,
                                                preferred_element_type=jnp.float32)

        hf_new, cf_new = _lstm_cell(g_f, c_f, H)
        hb_new, cb_new = _lstm_cell(g_b, c_b, H)

        m_f = t < lens                              # (B, 1) bool length mask
        m_b = rt < lens

        if emit_seq:
            out_f_ref[pl.ds(j, 1), :, :] = (
                jnp.where(m_f, hf_new, 0.0).astype(jnp.bfloat16)[None])
            out_b_ref[pl.ds(jr, 1), :, :] = (
                jnp.where(m_b, hb_new, 0.0).astype(jnp.bfloat16)[None])

        return (jnp.where(m_f, hf_new, h_f), jnp.where(m_f, cf_new, c_f),
                jnp.where(m_b, hb_new, h_b), jnp.where(m_b, cb_new, c_b))

    carry0 = (hf_scr[...], cf_scr[...], hb_scr[...], cb_scr[...])
    h_f, c_f, h_b, c_b = jax.lax.fori_loop(0, chunk, step, carry0,
                                           unroll=(chunk <= 16))
    # TODO(synk): at large B*H keep the carries in VMEM scratch inside the loop too
    #             (vreg pressure), and tile B over a parallel grid axis.
    hf_scr[...] = h_f
    cf_scr[...] = c_f
    hb_scr[...] = h_b
    cb_scr[...] = c_b

    @pl.when(ci == nT - 1)
    def _():
        hfin_ref[:, pl.ds(0, H)] = h_f              # fwd final state (t = len-1)
        hfin_ref[:, pl.ds(H, H)] = h_b              # bwd final state (after t = 0)


def bilstm_recurrence(pre, w_hh_f, w_hh_b, lengths_2d, hidden_dim, *,
                      time_chunk=None, emit_seq=True):
    """pre: [T, B, 8H] bf16 preactivations (fwd cols 0:4H | bwd cols 4H:8H).

    Returns (out_f [T,B,H] bf16, out_b [T,B,H] bf16, h_fin [B,2H] f32) if emit_seq,
    else h_fin only (final layer: the per-step sequence output is dead)."""
    T, B, _ = pre.shape
    H = hidden_dim
    assert (4 * H) % 128 == 0, "pre column split needs 4H lane-aligned (H % 32 == 0)"

    chunk = min(T, 64) if time_chunk is None else max(1, min(time_chunk, T))
    while T % chunk:
        chunk -= 1
    nT = T // chunk

    kernel = functools.partial(_bilstm_chunk_kernel, emit_seq=emit_seq,
                               chunk=chunk, hidden_dim=H)

    in_specs = [
        pl.BlockSpec((chunk, B, 4 * H), lambda i: (i, 0, 0)),           # fwd pre chunk
        pl.BlockSpec((chunk, B, 4 * H), lambda i: (nT - 1 - i, 0, 1)),  # bwd pre chunk
        pl.BlockSpec((H, 4 * H), lambda i: (0, 0)),                     # W_hh fwd
        pl.BlockSpec((H, 4 * H), lambda i: (0, 0)),                     # W_hh bwd
        pl.BlockSpec((B, 1), lambda i: (0, 0)),                         # lengths
    ]
    scratch = [pltpu.VMEM((B, H), jnp.float32) for _ in range(4)]       # h/c carries

    if emit_seq:
        out_shape = (jax.ShapeDtypeStruct((T, B, H), jnp.bfloat16),
                     jax.ShapeDtypeStruct((T, B, H), jnp.bfloat16),
                     jax.ShapeDtypeStruct((B, 2 * H), jnp.float32))
        out_specs = [pl.BlockSpec((chunk, B, H), lambda i: (i, 0, 0)),
                     pl.BlockSpec((chunk, B, H), lambda i: (nT - 1 - i, 0, 0)),
                     pl.BlockSpec((B, 2 * H), lambda i: (0, 0))]
    else:
        out_shape = jax.ShapeDtypeStruct((B, 2 * H), jnp.float32)
        out_specs = pl.BlockSpec((B, 2 * H), lambda i: (0, 0))

    return pl.pallas_call(
        kernel,
        out_shape=out_shape,
        grid_spec=pltpu.PrefetchScalarGridSpec(
            num_scalar_prefetch=0,
            grid=(nT,),
            in_specs=in_specs,
            out_specs=out_specs,
            scratch_shapes=scratch),
        compiler_params=pltpu.CompilerParams(
            dimension_semantics=("arbitrary",),
            vmem_limit_bytes=32 * 1024 * 1024),
    )(pre, pre, w_hh_f, w_hh_b, lengths_2d)


# ----------------------------------- full forward ------------------------------------

def lstm_rnn_forward(params, text, text_lengths, *, time_chunk=None):
    """text: [T, B] int32 token ids; text_lengths: [B] int32."""
    H = params["hidden_dim"]

    # embedding lookup (data-dependent gather; plain XLA). padding_idx row is zero.
    embedded = params["embedding"][text]                         # [T, B, E] bf16
    # self.dropout(embedded): identity in eval mode
    T, B, E = embedded.shape
    lengths_2d = text_lengths.astype(jnp.int32).reshape(-1, 1)   # (B, 1)

    n_layers = len(params["lstm"])
    x_f = x_b = None
    h_fin = None
    for li, layer in enumerate(params["lstm"]):
        # hoisted input projection for BOTH directions: [T*B, D] x [D, 8H] bf16 matmul
        if li == 0:
            pre = _input_proj(_proj1_kernel, [embedded.reshape(T * B, E)],
                              [layer["w_ih"]], layer["b"])
        else:
            pre = _input_proj(_proj2_kernel,
                              [x_f.reshape(T * B, H), x_b.reshape(T * B, H)],
                              [layer["w_ih_top"], layer["w_ih_bot"]], layer["b"])
        pre = pre.reshape(T, B, 8 * H)

        if li == n_layers - 1:
            # final layer: skip the dead [T,B,2H] sequence writeback
            h_fin = bilstm_recurrence(pre, layer["w_hh_f"], layer["w_hh_b"],
                                      lengths_2d, H, time_chunk=time_chunk,
                                      emit_seq=False)
        else:
            x_f, x_b, h_fin = bilstm_recurrence(pre, layer["w_hh_f"], layer["w_hh_b"],
                                                lengths_2d, H, time_chunk=time_chunk,
                                                emit_seq=True)
        # inter-layer dropout of nn.LSTM: identity in eval mode

    # hidden = dropout(cat(hidden[-2], hidden[-1], dim=1)) -> identity dropout
    hidden = h_fin                                               # [B, 2H] f32
    # final FC: tiny (output_dim=3) matmul, plain XLA (would be all masked stores).
    return hidden @ params["fc_w"] + params["fc_b"]


# --------------------------- pure-JAX reference (numerics check) ---------------------

def lstm_rnn_reference(params, text, text_lengths):
    """lax.scan reference with the same bf16 rounding points as the kernels."""
    H = params["hidden_dim"]
    x = params["embedding"][text]                                # [T,B,E] bf16
    T, B = text.shape
    lens = text_lengths.astype(jnp.int32)[None, :, None]
    tmask = jnp.arange(T, dtype=jnp.int32)[:, None, None] < lens  # [T,B,1]

    hidden = None
    for li, layer in enumerate(params["lstm"]):
        if li == 0:
            pre = jnp.dot(x, layer["w_ih"], preferred_element_type=jnp.float32)
        else:
            pre = (jnp.dot(x[..., :H], layer["w_ih_top"],
                           preferred_element_type=jnp.float32)
                   + jnp.dot(x[..., H:], layer["w_ih_bot"],
                             preferred_element_type=jnp.float32))
        pre = (pre + layer["b"]).astype(jnp.bfloat16)            # [T,B,8H]

        def run_dir(pre_dir, w_hh, reverse):
            def step(carry, inp):
                h, c = carry
                p, m = inp
                g = p.astype(jnp.float32) + jnp.dot(h.astype(jnp.bfloat16), w_hh,
                                                    preferred_element_type=jnp.float32)
                h_new, c_new = _lstm_cell(g, c, H)
                out = jnp.where(m, h_new, 0.0)
                return (jnp.where(m, h_new, h), jnp.where(m, c_new, c)), out
            init = (jnp.zeros((B, H), jnp.float32), jnp.zeros((B, H), jnp.float32))
            (h_fin, _), outs = jax.lax.scan(step, init, (pre_dir, tmask),
                                            reverse=reverse)
            return outs, h_fin

        out_f, hf = run_dir(pre[..., :4 * H], layer["w_hh_f"], reverse=False)
        out_b, hb = run_dir(pre[..., 4 * H:], layer["w_hh_b"], reverse=True)
        x = jnp.concatenate([out_f, out_b], axis=-1).astype(jnp.bfloat16)
        hidden = jnp.concatenate([hf, hb], axis=-1)

    return hidden @ params["fc_w"] + params["fc_b"]


# ------------------------------- parameter construction ------------------------------

def init_params(key, vocab_size, embedding_dim, hidden_dim, output_dim,
                n_layers, pad_idx):
    keys = jax.random.split(key, 3 + n_layers * 8)
    k_iter = iter(keys)
    H = hidden_dim

    emb = 0.1 * jax.random.normal(next(k_iter), (vocab_size, embedding_dim),
                                  jnp.float32)
    emb = emb.at[pad_idx].set(0.0)     # padding_idx row zeroed (as PyTorch init does)

    lstm_layers = []
    for layer in range(n_layers):
        d_in = embedding_dim if layer == 0 else 2 * H
        per_dir = []
        for _ in range(2):             # fwd, bwd
            # gate column order (i, f, o, g) -- a permutation of PyTorch's (i, f, g, o);
            # permute columns accordingly when importing a PyTorch checkpoint.
            w_ih = 0.1 * jax.random.normal(next(k_iter), (d_in, 4 * H), jnp.float32)
            w_hh = 0.1 * jax.random.normal(next(k_iter), (H, 4 * H), jnp.float32)
            b_ih = 0.1 * jax.random.normal(next(k_iter), (1, 4 * H), jnp.float32)
            b_hh = 0.1 * jax.random.normal(next(k_iter), (1, 4 * H), jnp.float32)
            per_dir.append((w_ih, w_hh, b_ih + b_hh))
        (wif, whf, bf_), (wib, whb, bb_) = per_dir
        w_ih_fused = jnp.concatenate([wif, wib], axis=1).astype(jnp.bfloat16)  # [D,8H]
        entry = {
            "b": jnp.concatenate([bf_, bb_], axis=1),             # [1, 8H] f32
            "w_hh_f": whf.astype(jnp.bfloat16),                    # [H, 4H] bf16
            "w_hh_b": whb.astype(jnp.bfloat16),
        }
        if layer == 0:
            entry["w_ih"] = w_ih_fused                             # [E, 8H]
        else:
            # split by input-feature half (fwd / bwd sequence outputs of prev layer)
            entry["w_ih_top"] = w_ih_fused[:H]                     # [H, 8H]
            entry["w_ih_bot"] = w_ih_fused[H:]                     # [H, 8H]
        lstm_layers.append(entry)

    fc_w = 0.1 * jax.random.normal(next(k_iter), (2 * H, output_dim), jnp.float32)
    fc_b = 0.1 * jax.random.normal(next(k_iter), (1, output_dim), jnp.float32)

    return {"embedding": emb.astype(jnp.bfloat16), "lstm": lstm_layers,
            "fc_w": fc_w, "fc_b": fc_b, "hidden_dim": H}


# ---------------------------------------- main ---------------------------------------

if __name__ == "__main__":
    vocab_size = 50
    embedding_dim = 16
    hidden_dim = 32
    output_dim = 3
    n_layers = 2
    pad_idx = 0
    T, B = 8, 2

    key = jax.random.PRNGKey(0)
    k_params, k_text = jax.random.split(key)
    params = init_params(k_params, vocab_size, embedding_dim, hidden_dim,
                         output_dim, n_layers, pad_idx)

    # deterministic token ids in [1, vocab), padded with pad_idx past each length
    text = jax.random.randint(k_text, (T, B), 1, vocab_size, dtype=jnp.int32)
    text_lengths = jnp.array([8, 5], dtype=jnp.int32)
    time_idx = jnp.arange(T, dtype=jnp.int32)[:, None]
    text = jnp.where(time_idx < text_lengths[None, :], text, pad_idx)

    # time_chunk=4 -> 2 time-chunk grid steps (exercises the chunked recurrence path)
    logits = lstm_rnn_forward(params, text, text_lengths, time_chunk=4)
    logits = jax.block_until_ready(logits)

    ref = jax.block_until_ready(lstm_rnn_reference(params, text, text_lengths))

    assert logits.shape == (B, output_dim)
    assert bool(jnp.all(jnp.isfinite(logits)))
    assert bool(jnp.allclose(logits, ref, rtol=5e-2, atol=5e-2)), (logits, ref)
    print("KERNEL_OK")
</pallas_src>

<mosaic_0001>
module attributes {stable_mosaic.version = 11 : i64} {
  func.func @_proj1_kernel(%arg0: i32, %arg1: memref<16x16xbf16, #tpu.memory_space<vmem>>, %arg2: memref<16x256xbf16, #tpu.memory_space<vmem>>, %arg3: memref<1x256xf32, #tpu.memory_space<vmem>>, %arg4: memref<16x256xbf16, #tpu.memory_space<vmem>>) attributes {dimension_semantics = [#tpu.dimension_semantics<parallel>], iteration_bounds = array<i64: 1>, scalar_prefetch = 0 : i64, scratch_operands = 0 : i64, tpu.core_type = #tpu.core_type<tc>, window_params = [{transform_indices = @transform_0, window_bounds = array<i64: 16, 16>}, {pipeline_mode = #tpu.pipeline_mode<synchronous>, transform_indices = @transform_1, window_bounds = array<i64: 16, 256>}, {pipeline_mode = #tpu.pipeline_mode<synchronous>, transform_indices = @transform_2, window_bounds = array<i64: 1, 256>}, {transform_indices = @transform_3, window_bounds = array<i64: 16, 256>}]} {
    %c0 = arith.constant 0 : index
    %c0_0 = arith.constant 0 : index
    %0 = vector.load %arg1[%c0, %c0_0] : memref<16x16xbf16, #tpu.memory_space<vmem>>, vector<16x16xbf16>
    %c0_1 = arith.constant 0 : index
    %c0_2 = arith.constant 0 : index
    %1 = vector.load %arg2[%c0_1, %c0_2] : memref<16x256xbf16, #tpu.memory_space<vmem>>, vector<16x256xbf16>
    %cst = arith.constant dense<0.000000e+00> : vector<16x256xf32>
    %2 = tpu.matmul %0, %1, %cst {dimension_numbers = #tpu.dot_dimension_numbers<[1], [0], [0], [1], [0, 0, 1, 1], [], []>} : vector<16x16xbf16>, vector<16x256xbf16>, vector<16x256xf32> -> vector<16x256xf32>
    %c0_3 = arith.constant 0 : index
    %c0_4 = arith.constant 0 : index
    %3 = vector.load %arg3[%c0_3, %c0_4] : memref<1x256xf32, #tpu.memory_space<vmem>>, vector<1x256xf32>
    %4 = vector.broadcast %3 : vector<1x256xf32> to vector<16x256xf32>
    %5 = arith.addf %2, %4 : vector<16x256xf32>
    %6 = arith.truncf %5 : vector<16x256xf32> to vector<16x256xbf16>
    %c0_5 = arith.constant 0 : index
    %c0_6 = arith.constant 0 : index
    %7 = vector.load %arg4[%c0_5, %c0_6] : memref<16x256xbf16, #tpu.memory_space<vmem>>, vector<16x256xbf16>
    tpu.vector_store %arg4[%c0_5, %c0_6], %6 {strides = array<i32>} : memref<16x256xbf16, #tpu.memory_space<vmem>>, vector<16x256xbf16>,
    return
  }
  func.func @transform_0(%arg0: i32) -> (i32, i32) {
    %c0_i32 = arith.constant 0 : i32
    %c0_i32_0 = arith.constant 0 : i32
    return %arg0, %c0_i32 : i32, i32
  }
  func.func @transform_1(%arg0: i32) -> (i32, i32) {
    %c0_i32 = arith.constant 0 : i32
    %c0_i32_0 = arith.constant 0 : i32
    %c0_i32_1 = arith.constant 0 : i32
    return %c0_i32, %c0_i32_0 : i32, i32
  }
  func.func @transform_2(%arg0: i32) -> (i32, i32) {
    %c0_i32 = arith.constant 0 : i32
    %c0_i32_0 = arith.constant 0 : i32
    %c0_i32_1 = arith.constant 0 : i32
    return %c0_i32, %c0_i32_0 : i32, i32
  }
  func.func @transform_3(%arg0: i32) -> (i32, i32) {
    %c0_i32 = arith.constant 0 : i32
    %c0_i32_0 = arith.constant 0 : i32
    return %arg0, %c0_i32 : i32, i32
  }
}

</mosaic_0001>

<bundles_post_ra>
// kernel: tpu_custom_call.1
= control target key start
LH: loop header
LB: loop body
LE: loop exit
PB: predicated region body
PF: predicated region fallthrough
CT: control target
= control target key end

     0   :  { %8 = vsyncpa [#allocation3], 0  ;;  %s315_s0 = inlined_call_operand.hbm [shape: bf16[16,16], index: 0, kind: input, shape index: {}]   ;;  %s316_s1 = inlined_call_operand.hbm [shape: bf16[16,256], index: 1, kind: input, shape index: {}]   ;;  %s317_s2 = inlined_call_operand.hbm [shape: f32[1,256], index: 2, kind: input, shape index: {}]   ;;  %s318_s3 = inlined_call_operand.hbm [shape: bf16[16,256], index: 3, kind: output, shape index: {}]  }
   0x1   :  { %9 = vsyncpa [#allocation6], 0  ;;  %s28_s14 = sshll.u32 %s316_s1, 4  ;;  %s29_s14 = int_to_ptr.hbm [resolvable:$true] %s28_s14 }
   0x2   :  { %10 = vsyncpa [#allocation4], 0  ;;  %s269_s15 = smov [#allocation5]   ;;  %s15_s19 = sshll.u32 %s315_s0, 4  ;;  %s16_s19 = int_to_ptr.hbm [resolvable:$true] %s15_s19 }
   0x3   :  { %s30_s16 = sshll.u32 %s269_s15, 4  ;;  %s270_s20 = smov 128   ;;  %s31_s16 = int_to_ptr.vmem [resolvable:$true] %s30_s16 }
   0x4   :  { %s271_s21 = smov 8   ;;  %s272_s22 = smov [#allocation2]  }
   0x5   :  { %36 = dma.hbm_to_vmem [thread:$0]  %s29_s14, 256, %s31_s16, [#allocation6], %s270_s20, %s270_s20, %s271_s21  }
   0x6   :  { %s17_s23 = sshll.u32 %s272_s22, 4  ;;  %s273_s1 = smov 64   ;;  %s18_s23 = int_to_ptr.vmem [resolvable:$true] %s17_s23 }
   0x7   :  { %s274_s24 = smov 4   ;;  %s42_s27 = sshll.u32 %s317_s2, 4  ;;  %s43_s27 = int_to_ptr.hbm [resolvable:$true] %s42_s27 }
   0x8   :  { %23 = dma.hbm_to_vmem [thread:$0]  %s16_s19, 128, %s18_s23, [#allocation3], %s273_s1, %s273_s1, %s274_s24  }
   0x9   :  { %s275_s28 = smov [#allocation7]  }
   0xa   :  { %s44_s0 = sshll.u32 %s275_s28, 4  ;;  %s45_s0 = int_to_ptr.vmem [resolvable:$true] %s44_s0 }
   0xb   :  { %47 = dma.hbm_to_vmem [thread:$0]  %s43_s27, 32, %s45_s0, [#allocation6]  }
   0xc   :  { %263 = dma.done.wait [#allocation3], 128  }
   0xd   :  { %264 = vsyncadd [#allocation3], 4294967168 }
   0xe   :  { %265 = dma.done.wait [#allocation6], 288  }
   0xf   :  { %266 = vsyncadd [#allocation6], 4294967008  ;;  %v148_v0 = vld [vmem:[#allocation5] sm:$0xf]  ;;  %v158_v1 = vld [vmem:[#allocation5 + $0x4] sm:$0xf0] }
  0x10   :  { %v157_v2 = vld [vmem:[#allocation5 + $0x4] sm:$0xf]  ;;  %v149_v3 = vor.u32 %v158_v1, %v148_v0  ;;  %v150_v4 = vld [vmem:[#allocation5 + $0x8] sm:$0xf0]  ;;  %v156_v6 = vld [vmem:[#allocation2] sm:$0xff]  ;;  %vm86_vm0 = vcmask 130048  }
  0x11   :  { %v153_v5 = vor.u32 %v157_v2, %v150_v4  ;;  %v65_v7 = vld [vmem:[#allocation7] sm:$0x3]  ;;  %s276_s2 = smov [#allocation8]   ;;  %s128_s5 = sshll.u32 %s318_s3, 4  ;;  %s129_s5 = int_to_ptr.hbm [resolvable:$true] %s128_s5 }
  0x12   :  { %97 = vmatpush.bf16.msra.mxu0 %v149_v3  ;;  %v67_v8 = vperm.slane %v65_v7, 0  ;;  %v68_v9 = vperm.slane %v65_v7, 1  ;;  %s126_s29 = sshll.u32 %s276_s2, 4  ;;  %s127_s29 = int_to_ptr.vmem [resolvable:$true] %s126_s29 }
  0x13   :  { %111 = vmatpush.bf16.msra.mxu1 %v153_v5 }
  0x15   :  { %154 = vmatmul.msk.bf16.vlgmr.msra.gmra.mxu0 %vm86_vm0, %v156_v6 }
  0x16   :  { %155 = vmatmul.msk.bf16.vlgmr.msra.gmra.mxu1 %vm86_vm0, %v156_v6 }
  0x92   :  { %v99_v10 = vpop.f32.mrf.mxu0 }
  0x93   :  { %v100_v11 = vadd.f32 %v99_v10, %v67_v8  ;;  %v113_v12 = vpop.f32.mrf.mxu1 }
  0x94   :  { %v114_v13 = vadd.f32 %v113_v12, %v68_v9 }
  0x96   :  { %v118_v14 = vpack.c.bf16 %v114_v13, %v100_v11 }
  0x98   :  { %120 = vst [vmem:[#allocation8] sm:$0xff] %v118_v14 }
  0x9a   :  { %v101_v15 = vpop.f32.mrf.mxu0 }
  0x9b   :  { %v102_v16 = vadd.f32 %v101_v15, %v67_v8  ;;  %v115_v17 = vpop.f32.mrf.mxu1 }
  0x9c   :  { %v116_v18 = vadd.f32 %v115_v17, %v68_v9 }
  0x9e   :  { %v119_v19 = vpack.c.bf16 %v116_v18, %v102_v16 }
  0xa0   :  { %121 = vst [vmem:[#allocation8 + $0x8] sm:$0xff] %v119_v19 }
  0xa1   :  { %134 = dma.vmem_to_hbm [thread:$0]  %s127_s29, 256, %s129_s5, [#allocation4], %s270_s20, %s270_s20, %s271_s21  }
  0xa2   :  { %267 = dma.done.wait [#allocation4], 256  }
  0xa3   :  { %268 = vsyncadd [#allocation4], 4294967040 }
  0xa4   :  { %139 = vsyncpa [#allocation3], 1 }
  0xa5   :  { %140 = vsyncpa [#allocation6], 1 }
  0xa6   :  { %141 = vsyncpa [#allocation4], 1 }

</bundles_post_ra>
